<compile_context>
chip_gen: v6e
topology: v6e:2x2x1
jax: 0.10.0
libtpu: 0.0.40
codegen_flags: <defaults>
</compile_context>

<pallas_src>
import jax
import jax.numpy as jnp
from jax.experimental import pallas as pl
from jax.experimental.pallas import tpu as pltpu

LANE = 128  # vreg lane width


def linear_kernel(x_ref, w_ref, b_ref, o_ref):
    # x_ref/o_ref: (TILE_R, 128) VMEM tiles; w_ref/b_ref: (1,) SMEM scalars.
    # Pure VPU scale-and-shift (no MXU, no transpose).
    o_ref[...] = x_ref[...] * w_ref[0] + b_ref[0]


def _round_up(a, m):
    return ((a + m - 1) // m) * m


def linear_forward(x, weight, bias, *, tile_rows=512):
    """x: (N, 1) f32, weight: (1, 1) f32, bias: (1,) f32 -> (N, 1) f32."""
    N, in_f = x.shape
    assert in_f == 1 and weight.shape == (1, 1) and bias.shape == (1,)

    # --- lane-dense repack: (N, 1) -> (rows, 128), padded ---
    rows = max(8, _round_up(pl.cdiv(N, LANE), 8))   # sublane multiple of 8
    tile_r = min(_round_up(tile_rows, 8), rows)     # tile rows (mult of 8)
    rows = _round_up(rows, tile_r)                  # rows divisible by tile
    padded = rows * LANE

    x_flat = x.reshape(-1)
    x2d = jnp.pad(x_flat, (0, padded - N)).reshape(rows, LANE)

    # Constants as SMEM scalars.
    w_s = weight.reshape(1)
    b_s = bias.reshape(1)

    y2d = pl.pallas_call(
        linear_kernel,
        out_shape=jax.ShapeDtypeStruct((rows, LANE), x.dtype),
        grid=(rows // tile_r,),
        in_specs=[
            pl.BlockSpec((tile_r, LANE), lambda i: (i, 0)),
            pl.BlockSpec(memory_space=pltpu.MemorySpace.SMEM),
            pl.BlockSpec(memory_space=pltpu.MemorySpace.SMEM),
        ],
        out_specs=pl.BlockSpec((tile_r, LANE), lambda i: (i, 0)),
        compiler_params=pltpu.CompilerParams(
            dimension_semantics=("parallel",)),
    )(x2d, w_s, b_s)

    # Un-pack: drop padding, restore (N, 1).
    return y2d.reshape(-1)[:N].reshape(N, 1)


if __name__ == "__main__":
    key = jax.random.PRNGKey(0)
    kw, kb, kx = jax.random.split(key, 3)

    # nn.Linear(1, 1) parameter shapes: weight (out=1, in=1), bias (1,).
    weight = jax.random.uniform(kw, (1, 1), jnp.float32, minval=-1.0, maxval=1.0)
    bias = jax.random.uniform(kb, (1,), jnp.float32, minval=-1.0, maxval=1.0)

    # Example input: hour_var = [[4.0]] generalized to a small batch of 8.
    x = jnp.concatenate(
        [jnp.array([[4.0]], dtype=jnp.float32),
         jax.random.normal(kx, (7, 1), jnp.float32)],
        axis=0,
    )  # (8, 1)

    y = jax.block_until_ready(linear_forward(x, weight, bias))
    y_ref = x @ weight.T + bias
    assert y.shape == (8, 1)
    assert jnp.allclose(y, y_ref, atol=1e-6), (y, y_ref)

    # Second check: ragged N with a small tile so the grid has >1 step and
    # padding/slicing paths are exercised.
    x_big = jax.random.normal(kx, (3000, 1), jnp.float32)
    y_big = jax.block_until_ready(linear_forward(x_big, weight, bias, tile_rows=8))
    y_big_ref = x_big @ weight.T + bias
    assert y_big.shape == (3000, 1)
    assert jnp.allclose(y_big, y_big_ref, atol=1e-6)

    print("KERNEL_OK")
</pallas_src>

<mosaic_0001>
module attributes {stable_mosaic.version = 11 : i64} {
  func.func @linear_kernel(%arg0: i32, %arg1: memref<8x128xf32, #tpu.memory_space<vmem>>, %arg2: memref<1xf32, #tpu.memory_space<smem>>, %arg3: memref<1xf32, #tpu.memory_space<smem>>, %arg4: memref<8x128xf32, #tpu.memory_space<vmem>>) attributes {dimension_semantics = [#tpu.dimension_semantics<parallel>], iteration_bounds = array<i64: 1>, scalar_prefetch = 0 : i64, scratch_operands = 0 : i64, tpu.core_type = #tpu.core_type<tc>, window_params = [{transform_indices = @transform_0, window_bounds = array<i64: 8, 128>}, {transform_indices = @transform_1, window_bounds = array<i64: 1>}, {transform_indices = @transform_2, window_bounds = array<i64: 1>}, {transform_indices = @transform_3, window_bounds = array<i64: 8, 128>}]} {
    %c0 = arith.constant 0 : index
    %c0_0 = arith.constant 0 : index
    %0 = vector.load %arg1[%c0, %c0_0] : memref<8x128xf32, #tpu.memory_space<vmem>>, vector<8x128xf32>
    %c0_1 = arith.constant 0 : index
    %1 = memref.load %arg2[%c0_1] : memref<1xf32, #tpu.memory_space<smem>>
    %2 = vector.broadcast %1 : f32 to vector<8x128xf32>
    %3 = arith.mulf %0, %2 : vector<8x128xf32>
    %c0_2 = arith.constant 0 : index
    %4 = memref.load %arg3[%c0_2] : memref<1xf32, #tpu.memory_space<smem>>
    %5 = vector.broadcast %4 : f32 to vector<8x128xf32>
    %6 = arith.addf %3, %5 : vector<8x128xf32>
    %c0_3 = arith.constant 0 : index
    %c0_4 = arith.constant 0 : index
    %7 = vector.load %arg4[%c0_3, %c0_4] : memref<8x128xf32, #tpu.memory_space<vmem>>, vector<8x128xf32>
    tpu.vector_store %arg4[%c0_3, %c0_4], %6 {strides = array<i32>} : memref<8x128xf32, #tpu.memory_space<vmem>>, vector<8x128xf32>,
    return
  }
  func.func @transform_0(%arg0: i32) -> (i32, i32) {
    %c0_i32 = arith.constant 0 : i32
    %c0_i32_0 = arith.constant 0 : i32
    return %arg0, %c0_i32 : i32, i32
  }
  func.func @transform_1(%arg0: i32) -> i32 {
    %c0_i32 = arith.constant 0 : i32
    %c0_i32_0 = arith.constant 0 : i32
    return %c0_i32 : i32
  }
  func.func @transform_2(%arg0: i32) -> i32 {
    %c0_i32 = arith.constant 0 : i32
    %c0_i32_0 = arith.constant 0 : i32
    return %c0_i32 : i32
  }
  func.func @transform_3(%arg0: i32) -> (i32, i32) {
    %c0_i32 = arith.constant 0 : i32
    %c0_i32_0 = arith.constant 0 : i32
    return %arg0, %c0_i32 : i32, i32
  }
}

</mosaic_0001>

<bundles_post_ra>
// kernel: tpu_custom_call.1
= control target key start
LH: loop header
LB: loop body
LE: loop exit
PB: predicated region body
PF: predicated region fallthrough
CT: control target
= control target key end

     0   :  { %10 = vsyncpa [#allocation5], 0  ;;  %s132_s0 = inlined_call_operand.hbm [shape: f32[8,128], index: 0, kind: input, shape index: {}]   ;;  %s133_s1 = inlined_call_operand.<no memory space> [shape: f32[1], index: 1, kind: input, shape index: {}]   ;;  %s134_s2 = inlined_call_operand.<no memory space> [shape: f32[1], index: 2, kind: input, shape index: {}]   ;;  %s135_s3 = inlined_call_operand.hbm [shape: f32[8,128], index: 3, kind: output, shape index: {}]  }
   0x1   :  { %11 = vsyncpa [#allocation6], 0  ;;  %s98_s12 = smov [#allocation4]  }
   0x2   :  { %s18_s13 = sshll.u32 %s98_s12, 4  ;;  %s19_s13 = int_to_ptr.vmem [resolvable:$true] %s18_s13 }
   0x3   :  { %s62_s14 = scalar_lea.vmem %s19_s13, 128  ;;  %p67_p1 = scmp.lt.s32.totalorder %s19_s13, %s19_s13 }
   0x4   :  { %p63_p0 = scmp.ne.s32.totalorder %s19_s13, %s62_s14  ;;  %p68_p2 = scmp.lt.s32.totalorder %s62_s14, %s62_s14 }
   0x6   :  { %p69_p3 = por %p68_p2, %p67_p1 }
   0x8   :  { %p70_p4 = pnand %p69_p3, %p63_p0 }
   0xa   :  { %73 = shalt.err (!%p70_p4)
}
   0xb   :  { %21 = dma.hbm_to_vmem [thread:$0]  %s132_s0, 128, %s19_s13, [#allocation5]  }
   0xc   :  { %94 = dma.done.wait [#allocation5], 128  }
   0xd   :  { %95 = vsyncadd [#allocation5], 4294967168  ;;  %v31_v0 = vstv %s133_s1  ;;  %v29_v1 = vld [vmem:[#allocation4] sm:$0xff]  ;;  %v34_v2 = vstv %s134_s2  ;;  %s99_s21 = smov [#allocation7]  }
   0xe   :  { %s43_s22 = sshll.u32 %s99_s21, 4  ;;  %v32_v3 = vmul.f32 %v31_v0, %v29_v1  ;;  %s44_s22 = int_to_ptr.vmem [resolvable:$true] %s43_s22 }
   0xf   :  { %s74_s23 = scalar_lea.vmem %s44_s22, 128  ;;  %p79_p6 = scmp.lt.s32.totalorder %s44_s22, %s44_s22 }
  0x10   :  { %v35_v4 = vadd.f32 %v34_v2, %v32_v3  ;;  %p75_p5 = scmp.ne.s32.totalorder %s44_s22, %s74_s23  ;;  %p80_p7 = scmp.lt.s32.totalorder %s74_s23, %s74_s23 }
  0x12   :  { %36 = vst [vmem:[#allocation7] sm:$0xff] %v35_v4  ;;  %p81_p8 = por %p80_p7, %p79_p6 }
  0x14   :  { %p82_p9 = pnand %p81_p8, %p75_p5 }
  0x16   :  { %85 = shalt.err (!%p82_p9)
}
  0x17   :  { %46 = dma.vmem_to_hbm [thread:$0]  %s44_s22, 128, %s135_s3, [#allocation6]  }
  0x18   :  { %96 = dma.done.wait [#allocation6], 128  }
  0x19   :  { %97 = vsyncadd [#allocation6], 4294967168 }
  0x1a   :  { %50 = vsyncpa [#allocation5], 1 }
  0x1b   :  { %51 = vsyncpa [#allocation6], 1 }

</bundles_post_ra>
